<compile_context>
chip_gen: v5e
topology: v5e:2x2
jax: 0.10.0
libtpu: 0.0.40
codegen_flags: <defaults>
</compile_context>

<pallas_src>
import functools

import jax
import jax.numpy as jnp
from jax.experimental import pallas as pl
from jax.experimental.pallas import tpu as pltpu

_LANE = 128


def _round_up(x, m):
    return ((x + m - 1) // m) * m


def _int_pow(x, gamma):
    """(1 - pt)**gamma, unrolled at trace time for small integer gamma."""
    g = float(gamma)
    gi = int(g)
    if g == float(gi) and 0 <= gi <= 8:
        r = jnp.ones_like(x)
        for _ in range(gi):
            r = r * x
        return r
    return jnp.power(x, jnp.float32(g))


def _make_focal_kernel(n_rows, alpha, gamma, hard_targets, needs_mask):
    """Kernel over one (tm, lanes) block; writes one f32 partial sum to SMEM."""

    def kernel(x_ref, t_ref, out_ref):
        i = pl.program_id(0)
        tm = x_ref.shape[0]

        x = x_ref[...].astype(jnp.float32)              # (tm, lanes)
        t = t_ref[...].astype(jnp.float32)              # (tm, lanes)

        # Numerically stable BCE-with-logits (same formula PyTorch uses).
        e = jnp.exp(-jnp.abs(x))                        # exp(-|x|)
        bce = jnp.maximum(x, 0.0) - x * t + jnp.log1p(e)

        if hard_targets:
            # pt = exp(-bce) = exp(x*t - max(x,0)) / (1 + e).  For t in {0,1}
            # the numerator is exactly `e` or `1` depending on sign(x) vs t,
            # so the second exp becomes a select + (approx) reciprocal.
            num = jnp.where((x >= 0.0) != (t > 0.5), e, jnp.float32(1.0))
            pt = num * pl.reciprocal(1.0 + e, approx=True)
        else:
            pt = jnp.exp(-bce)

        focal = _int_pow(1.0 - pt, gamma) * bce
        if alpha != 1.0:
            focal = jnp.float32(alpha) * focal

        def _masked_sum():
            # Global row index; fits int32 for any realistic input size
            # (rows < 2**31 means > 2.7e11 elements before overflow).
            row = i * tm + jax.lax.broadcasted_iota(jnp.int32, focal.shape, 0)
            # jnp.where is a select, so Inf/NaN produced from out-of-bounds
            # garbage in the boundary block can never leak into the sum.
            return jnp.sum(jnp.where(row < n_rows, focal, jnp.float32(0.0)))

        # NOTE: per-block f32 accumulation of up to tm*lanes values; fine for
        # the default tile budget.  Output stays a tiny SMEM scalar per block
        # (lane-dense VMEM partials were reviewed as low-priority).
        if not needs_mask:
            out_ref[0, 0] = jnp.sum(focal)
        else:
            last = pl.num_programs(0) - 1

            @pl.when(i == last)
            def _():
                out_ref[0, 0] = _masked_sum()

            @pl.when(i != last)
            def _():
                out_ref[0, 0] = jnp.sum(focal)

    return kernel


def _pick_tile_rows(rows, lanes, block_rows):
    """Row-tile size: large (amortize ~0.35us/step grid overhead), 8-aligned,
    and small enough that the grid has >= 2 blocks when there is enough work
    (so the "parallel" axis uses both TensorCores on v7x)."""
    budget = max((int(block_rows) * _LANE) // max(lanes, 1), 8)
    budget = _round_up(budget, 8)
    two_blocks = _round_up(pl.cdiv(rows, 2), 8)
    return max(min(budget, two_blocks), 8)


@functools.partial(
    jax.jit, static_argnames=("alpha", "gamma", "block_rows", "hard_targets")
)
def focal_loss(predictions, targets, *, alpha=1.0, gamma=2.0,
               block_rows=8192, hard_targets=False):
    """Focal loss over arbitrarily shaped logits/targets. Returns scalar f32.

    Inputs may be f32 or bf16 (bf16 halves HBM traffic; math stays f32).
    Set hard_targets=True when targets are exactly 0/1 to drop one
    transcendental per element (uses an approximate reciprocal).
    """
    if predictions.shape != targets.shape:
        raise ValueError("predictions and targets must have the same shape")

    if predictions.ndim == 0:
        predictions = predictions.reshape(1, 1)
        targets = targets.reshape(1, 1)

    n = int(predictions.size)

    # Zero-copy 2-D views (plain reshapes of contiguous arrays; no jnp.pad).
    if n % _LANE == 0:
        lanes = _LANE                                   # lane-dense fast path
        x2d = predictions.reshape(-1, _LANE)
        t2d = targets.reshape(-1, _LANE)
    else:
        # Keep the original trailing dim as the lane dim: block last dim ==
        # full array dim is always legal, so no lane padding is materialized.
        # TODO(synk): lane utilization is lanes/128 here; a 1-D-blocked kernel
        # could recover full lanes for non-128-aligned sizes.
        lanes = predictions.shape[-1]
        x2d = predictions.reshape(-1, lanes)
        t2d = targets.reshape(-1, lanes)

    rows = x2d.shape[0]
    tm = _pick_tile_rows(rows, lanes, block_rows)
    grid = pl.cdiv(rows, tm)
    needs_mask = (rows % tm) != 0

    kernel = _make_focal_kernel(rows, float(alpha), float(gamma),
                                bool(hard_targets), needs_mask)

    # VMEM: 2 inputs x 2 pipeline buffers + f32 intermediates; cap at 56 MiB
    # so the request stays inside v7x's 64 MiB per-TC VMEM (v5e/v6e: 128 MiB).
    tile_f32_bytes = tm * lanes * 4
    vmem_limit = int(min(max(8 * tile_f32_bytes + (16 << 20), 32 << 20),
                         56 << 20))

    bytes_in = n * (x2d.dtype.itemsize + t2d.dtype.itemsize)
    partials = pl.pallas_call(
        kernel,
        out_shape=jax.ShapeDtypeStruct((grid, 1), jnp.float32),
        grid_spec=pltpu.PrefetchScalarGridSpec(
            num_scalar_prefetch=0,
            grid=(grid,),
            in_specs=[
                pl.BlockSpec((tm, lanes), lambda i: (i, 0)),
                pl.BlockSpec((tm, lanes), lambda i: (i, 0)),
            ],
            out_specs=pl.BlockSpec(
                (1, 1), lambda i: (i, 0), memory_space=pltpu.MemorySpace.SMEM
            ),
        ),
        compiler_params=pltpu.CompilerParams(
            dimension_semantics=("parallel",),          # independent partials
            vmem_limit_bytes=vmem_limit,
        ),
        cost_estimate=pl.CostEstimate(
            flops=12 * n,
            transcendentals=(2 if hard_targets else 3) * n,
            bytes_accessed=bytes_in + grid * 4,
        ),
    )(x2d, t2d)

    return jnp.sum(partials) / jnp.float32(n)


def focal_loss_ref(x, t, alpha=1.0, gamma=2.0):
    x = x.astype(jnp.float32)
    t = t.astype(jnp.float32)
    bce = jnp.maximum(x, 0.0) - x * t + jnp.log1p(jnp.exp(-jnp.abs(x)))
    pt = jnp.exp(-bce)
    return jnp.mean(alpha * (1.0 - pt) ** gamma * bce)


if __name__ == "__main__":
    key = jax.random.PRNGKey(0)
    k1, k2, k3, k4, k5, k6 = jax.random.split(key, 6)

    # Case 1: lane-aligned (B, C, L) = (2, 4, 128) -- fast path, single block.
    x1 = jax.random.normal(k1, (2, 4, 128), dtype=jnp.float32)
    t1 = jax.random.bernoulli(k2, 0.3, (2, 4, 128)).astype(jnp.float32)
    out1 = jax.block_until_ready(focal_loss(x1, t1))
    ref1 = jax.block_until_ready(focal_loss_ref(x1, t1))
    assert jnp.allclose(out1, ref1, rtol=1e-5, atol=1e-5), (out1, ref1)

    # Case 2: non-lane-aligned shape + soft targets + alpha != 1
    # (general (rows, last_dim) zero-copy path).
    x2 = jax.random.normal(k3, (2, 4, 100), dtype=jnp.float32)
    t2 = jax.random.uniform(k4, (2, 4, 100), dtype=jnp.float32)
    out2 = jax.block_until_ready(focal_loss(x2, t2, alpha=0.5, gamma=2.0))
    ref2 = jax.block_until_ready(focal_loss_ref(x2, t2, alpha=0.5, gamma=2.0))
    assert jnp.allclose(out2, ref2, rtol=1e-5, atol=1e-5), (out2, ref2)

    # Case 3: lane-aligned, 2-block grid with a row-ragged last block
    # (exercises the pl.when-gated mask and the parallel block split).
    x3 = jax.random.normal(k5, (2, 4, 960), dtype=jnp.float32)
    t3 = jax.random.bernoulli(k6, 0.3, (2, 4, 960)).astype(jnp.float32)
    out3 = jax.block_until_ready(focal_loss(x3, t3))
    ref3 = jax.block_until_ready(focal_loss_ref(x3, t3))
    assert jnp.allclose(out3, ref3, rtol=1e-5, atol=1e-5), (out3, ref3)

    # Case 4: bf16 inputs accepted as-is (halves HBM traffic; math stays f32).
    x4 = x3.astype(jnp.bfloat16)
    t4 = t3.astype(jnp.bfloat16)
    out4 = jax.block_until_ready(focal_loss(x4, t4))
    ref4 = jax.block_until_ready(
        focal_loss_ref(x4.astype(jnp.float32), t4.astype(jnp.float32)))
    assert jnp.allclose(out4, ref4, rtol=1e-5, atol=1e-5), (out4, ref4)

    # Case 5: hard {0,1} targets fast path (2 transcendentals + approx recip).
    out5 = jax.block_until_ready(focal_loss(x3, t3, hard_targets=True))
    assert jnp.allclose(out5, ref3, rtol=5e-3, atol=5e-3), (out5, ref3)

    print("KERNEL_OK")
</pallas_src>

<mosaic_0001>
module attributes {stable_mosaic.version = 11 : i64} {
  func.func @kernel(%arg0: i32, %arg1: memref<8x128xf32, #tpu.memory_space<vmem>>, %arg2: memref<8x128xf32, #tpu.memory_space<vmem>>, %arg3: memref<1x1xf32, #tpu.memory_space<smem>>) attributes {dimension_semantics = [#tpu.dimension_semantics<parallel>], iteration_bounds = array<i64: 1>, scalar_prefetch = 0 : i64, scratch_operands = 0 : i64, tpu.core_type = #tpu.core_type<tc>, window_params = [{transform_indices = @transform_0, window_bounds = array<i64: 8, 128>}, {transform_indices = @transform_1, window_bounds = array<i64: 8, 128>}, {transform_indices = @transform_2, window_bounds = array<i64: 1, 1>}]} {
    %c0 = arith.constant 0 : index
    %c0_0 = arith.constant 0 : index
    %0 = vector.load %arg1[%c0, %c0_0] : memref<8x128xf32, #tpu.memory_space<vmem>>, vector<8x128xf32>
    %c0_1 = arith.constant 0 : index
    %c0_2 = arith.constant 0 : index
    %1 = vector.load %arg2[%c0_1, %c0_2] : memref<8x128xf32, #tpu.memory_space<vmem>>, vector<8x128xf32>
    %2 = math.absf %0 : vector<8x128xf32>
    %cst = arith.constant 0.000000e+00 : f32
    %3 = vector.broadcast %cst : f32 to vector<8x128xf32>
    %4 = arith.subf %3, %2 : vector<8x128xf32>
    %5 = math.exp %4 : vector<8x128xf32>
    %cst_3 = arith.constant 0.000000e+00 : f32
    %6 = vector.broadcast %cst_3 : f32 to vector<8x128xf32>
    %7 = arith.maximumf %0, %6 : vector<8x128xf32>
    %8 = arith.mulf %0, %1 : vector<8x128xf32>
    %9 = arith.subf %7, %8 : vector<8x128xf32>
    %10 = math.log1p %5 : vector<8x128xf32>
    %11 = arith.addf %9, %10 : vector<8x128xf32>
    %cst_4 = arith.constant 0.000000e+00 : f32
    %12 = vector.broadcast %cst_4 : f32 to vector<8x128xf32>
    %13 = arith.subf %12, %11 : vector<8x128xf32>
    %14 = math.exp %13 : vector<8x128xf32>
    %cst_5 = arith.constant 1.000000e+00 : f32
    %15 = vector.broadcast %cst_5 : f32 to vector<8x128xf32>
    %16 = arith.subf %15, %14 : vector<8x128xf32>
    %cst_6 = arith.constant 1.000000e+00 : f32
    %17 = vector.broadcast %cst_6 : f32 to vector<8x128xf32>
    %18 = arith.mulf %17, %16 : vector<8x128xf32>
    %19 = arith.mulf %18, %16 : vector<8x128xf32>
    %20 = arith.mulf %19, %11 : vector<8x128xf32>
    %21 = vector.shape_cast %20 : vector<8x128xf32> to vector<1x8x128xf32>
    %cst_7 = arith.constant dense<0.000000e+00> : vector<1xf32>
    %22 = vector.multi_reduction <add>, %21, %cst_7 [1, 2] : vector<1x8x128xf32> to vector<1xf32>
    %23 = vector.shape_cast %22 : vector<1xf32> to vector<1x1x1xf32>
    %24 = vector.extract %23[0, 0, 0] : f32 from vector<1x1x1xf32>
    %c0_8 = arith.constant 0 : index
    %c0_9 = arith.constant 0 : index
    %25 = memref.load %arg3[%c0_8, %c0_9] : memref<1x1xf32, #tpu.memory_space<smem>>
    memref.store %24, %arg3[%c0_8, %c0_9] : memref<1x1xf32, #tpu.memory_space<smem>>
    return
  }
  func.func @transform_0(%arg0: i32) -> (i32, i32) {
    %c0_i32 = arith.constant 0 : i32
    %c0_i32_0 = arith.constant 0 : i32
    return %arg0, %c0_i32 : i32, i32
  }
  func.func @transform_1(%arg0: i32) -> (i32, i32) {
    %c0_i32 = arith.constant 0 : i32
    %c0_i32_0 = arith.constant 0 : i32
    return %arg0, %c0_i32 : i32, i32
  }
  func.func @transform_2(%arg0: i32) -> (i32, i32) {
    %c0_i32 = arith.constant 0 : i32
    %c0_i32_0 = arith.constant 0 : i32
    return %arg0, %c0_i32 : i32, i32
  }
}

</mosaic_0001>

<bundles_post_ra>
// kernel: focal_loss.1
= control target key start
LH: loop header
LB: loop body
LE: loop exit
PB: predicated region body
PF: predicated region fallthrough
CT: control target
= control target key end

     0   :  { %7 = vsyncpa [#allocation3], 0  ;;  %s197_s0 = inlined_call_operand.hbm [shape: f32[8,128], index: 0, kind: input, shape index: {}]   ;;  %s198_s1 = inlined_call_operand.hbm [shape: f32[8,128], index: 1, kind: input, shape index: {}]   ;;  %s199_s2 = inlined_call_operand.hbm [shape: f32[1,1], index: 2, kind: output, shape index: {}]  }
   0x1   :  { %8 = vsyncpa [#allocation6], 0 }
   0x2   :  { %9 = vsyncpa [#allocation4], 0  ;;  %s15_s11 = sshll.u32 %s197_s0, 4  ;;  %s170_s12 = smov [#allocation2]   ;;  %s16_s11 = int_to_ptr.hbm [resolvable:$true] %s15_s11 }
   0x3   :  { %s17_s13 = sshll.u32 %s170_s12, 4  ;;  %s26_s16 = sshll.u32 %s198_s1, 4  ;;  %s18_s13 = int_to_ptr.vmem [resolvable:$true] %s17_s13  ;;  %s27_s16 = int_to_ptr.hbm [resolvable:$true] %s26_s16 }
   0x4   :  { %20 = dma.hbm_to_vmem [thread:$0]  %s16_s11, 128, %s18_s13, [#allocation3]  }
   0x5   :  { %s171_s17 = smov [#allocation5]  }
   0x6   :  { %s28_s18 = sshll.u32 %s171_s17, 4  ;;  %s29_s18 = int_to_ptr.vmem [resolvable:$true] %s28_s18 }
   0x7   :  { %31 = dma.hbm_to_vmem [thread:$0]  %s27_s16, 128, %s29_s18, [#allocation6]  }
   0x8   :  { %164 = dma.done.wait [#allocation3], 128  }
   0x9   :  { %165 = vsyncadd [#allocation3], 4294967168 }
   0xa   :  { %166 = dma.done.wait [#allocation6], 128  }
   0xb   :  { %167 = vsyncadd [#allocation6], 4294967168  ;;  %v40_v0 = vld [vmem:[#allocation2] sm:$0xff]  ;;  %v41_v7 = vld [vmem:[#allocation5] sm:$0xff]  ;;  %s81_s19 = sshll.u32 %s199_s2, 4  ;;  %s172_s21 = smov [#allocation7]   ;;  %s82_s19 = int_to_ptr.hbm [resolvable:$true] %s81_s19 }
   0xc   :  { %v42_v1 = vand.u32 2147483647, %v40_v0  ;;  %v46_v9 = vmax.f32 %v40_v0, 0.0  ;;  %v47_v10 = vmul.f32 %v41_v7, %v40_v0 }
   0xe   :  { %v43_v2 = vsub.f32 0.0, %v42_v1  ;;  %v48_v14 = vsub.f32 %v46_v9, %v47_v10 }
  0x10   :  { %v44_v3 = vmul.f32 1.442695, %v43_v2 }
  0x12   :  { %98 = vpow2.f32 %v44_v3 }
  0x18   :  { %v99_v4 = vpop.eup %98 }
  0x19   :  { %v49_v5 = vadd.f32 1.0, %v99_v4  ;;  %v52_v6 = vmul.f32 -0.5, %v99_v4  ;;  %v55_v11 = vand.u32 2147483647, %v99_v4 }
  0x1b   :  { %100 = vlog2.f32 %v49_v5  ;;  %v53_v8 = vadd.f32 1.0, %v52_v6  ;;  %vm56_vm0 = vcmp.lt.f32.partialorder %v55_v11, 0.0004427343 }
  0x1d   :  { %v54_v12 = vmul.f32 %v99_v4, %v53_v8 }
  0x21   :  { %v101_v13 = vpop.eup %100 }
  0x22   :  { %v51_v15 = vmul.f32 0.6931472, %v101_v13 }
  0x24   :  { %v57_v16 = vsel %vm56_vm0, %v54_v12, %v51_v15 }
  0x25   :  { %v58_v17 = vadd.f32 %v57_v16, %v48_v14 }
  0x27   :  { %v59_v18 = vsub.f32 0.0, %v58_v17 }
  0x29   :  { %v60_v19 = vmul.f32 1.442695, %v59_v18 }
  0x2b   :  { %102 = vpow2.f32 %v60_v19 }
  0x31   :  { %v103_v20 = vpop.eup %102 }
  0x32   :  { %v62_v21 = vsub.f32 1.0, %v103_v20 }
  0x34   :  { %v63_v22 = vmul.f32 %v62_v21, %v62_v21 }
  0x36   :  { %v64_v23 = vmul.f32 %v63_v22, %v58_v17 }
  0x38   :  { %65 = vadd.xlane.f32.xlu0 %v64_v23 }
  0xab   :  { %v66_v24 = vpop.xlane.xlu0 %65 }
  0xac   :  { %v67_v25 = vrot.slane %v66_v24, 4 }
  0xae   :  { %v68_v26 = vadd.f32 %v67_v25, %v66_v24 }
  0xb0   :  { %v69_v27 = vrot.slane %v68_v26, 2 }
  0xb2   :  { %v70_v28 = vadd.f32 %v69_v27, %v68_v26 }
  0xb4   :  { %v71_v29 = vrot.slane %v70_v28, 1 }
  0xb6   :  { %v72_v30 = vadd.f32 %v71_v29, %v70_v28 }
  0xb8   :  { %93 = vpush %v72_v30 }
  0xe9   :  { %s94_s20 = spop %93 }
  0xea   :  { %75 = sst [smem:[#allocation7]] %s94_s20 }
  0xeb   :  { %84 = dma.smem_to_hbm %s172_s21, 16, %s82_s19, [#allocation4]  }
  0xec   :  { %168 = dma.done.wait [#allocation4], 16  }
  0xed   :  { %169 = vsyncadd [#allocation4], 4294967280 }
  0xee   :  { %89 = sfence }
  0xef   :  { %90 = vsyncpa [#allocation3], 1 }
  0xf0   :  { %91 = vsyncpa [#allocation6], 1 }
  0xf1   :  { %92 = vsyncpa [#allocation4], 1 }

</bundles_post_ra>
